<compile_context>
chip_gen: v5e
topology: v5e:2x2
jax: 0.10.0
libtpu: 0.0.40
codegen_flags: <defaults>
</compile_context>

<pallas_src>
import functools

import jax
import jax.numpy as jnp
from jax.experimental import pallas as pl
from jax.experimental.pallas import tpu as pltpu


def _round_up(v: int, m: int) -> int:
    return ((v + m - 1) // m) * m


def _round_down(v: int, m: int) -> int:
    return (v // m) * m


def _text_encoder_kernel(x_ref, w_ref, b_ref, o_ref):
    # x_ref: (B_pad, T)   -- same block every grid step (x reused by all tiles)
    # w_ref: (T, tn)      -- lane-dense N-tile of the pre-transposed weight slab
    # b_ref: (1, tn)      -- matching bias tile (f32)
    # o_ref: (B_pad, tn)  -- lane-dense output tile
    y = jnp.dot(x_ref[...], w_ref[...], preferred_element_type=jnp.float32)
    y = y + b_ref[...]
    o_ref[...] = y.astype(o_ref.dtype)


def prepare_text_encoder_params(weights, biases, *, weight_dtype=None):
    """One-time (init-time) parameter preprocessing.

    weights: (depth, size, text_dim) in PyTorch nn.Linear layout; biases: (depth, size).
    Returns (w_all, b_all): a single lane-dense (T, N_pad) weight slab (column
    block l is W_l^T) and a (1, N_pad) f32 bias row, N_pad = round_up(depth*size, 128).
    `weight_dtype=jnp.bfloat16` is an opt-in accuracy/bandwidth trade-off
    (recommended default on v5e, where the weight stream dominates even more).
    """
    depth, size, T = weights.shape
    N = depth * size
    N_pad = _round_up(N, 128)
    w_all = jnp.transpose(weights, (2, 0, 1)).reshape(T, N)
    if weight_dtype is not None:
        w_all = w_all.astype(weight_dtype)
    b_all = biases.reshape(1, N).astype(jnp.float32)
    if N_pad != N:
        w_all = jnp.pad(w_all, ((0, 0), (0, N_pad - N)))
        b_all = jnp.pad(b_all, ((0, 0), (0, N_pad - N)))
    return w_all, b_all


def text_encoder_forward(x, w_all, b_all, *, depth, embedding_tokens, embedding_dim,
                         n_tile=None, n_buffers=3,
                         weight_vmem_budget_bytes=20 * 1024 * 1024):
    """x: (B, text_dim); (w_all, b_all) from prepare_text_encoder_params.

    Returns a list of `depth` arrays, each (B, embedding_tokens, embedding_dim),
    matching TextEncoder.forward (norm_layer=None -> Identity).
    """
    B, T = x.shape
    T_w, N_pad = w_all.shape
    assert T_w == T
    size = embedding_tokens * embedding_dim
    N = depth * size
    assert N <= N_pad and N_pad % 128 == 0

    # Pad batch to the f32 sublane tile so the MXU LHS is a clean (8,128) tile.
    B_pad = _round_up(B, 8)
    x_pad = x if B_pad == B else jnp.pad(x, ((0, B_pad - B), (0, 0)))
    # Pin mixed-precision lowering: match the LHS dtype to the streamed weight
    # dtype (accumulation stays f32 via preferred_element_type).
    if w_all.dtype == jnp.bfloat16 and x_pad.dtype != jnp.bfloat16:
        x_pad = x_pad.astype(jnp.bfloat16)

    w_itemsize = jnp.dtype(w_all.dtype).itemsize
    x_itemsize = jnp.dtype(x_pad.dtype).itemsize
    out_itemsize = jnp.dtype(x.dtype).itemsize

    # --- N tile: biggest lane-dense tile whose n_buffers weight copies fit the
    # explicit VMEM budget (keeps big tiles on v6e/v5e while staying inside
    # v7x's 64 MiB physical VMEM).
    if n_tile is None:
        tn_cap = _round_down(
            max(weight_vmem_budget_bytes // (max(n_buffers, 2) * T * w_itemsize), 128), 128)
        tn_cap = max(128, min(tn_cap, 4096))
    else:
        tn_cap = max(128, _round_up(n_tile, 128))
    tn = min(tn_cap, N_pad)
    if N_pad % tn != 0:
        # Prefer a divisor of N_pad (no ragged / masked last tile) if one exists
        # that is not much smaller than the cap; otherwise keep a ragged grid.
        cand = tn
        while cand >= max(128, tn // 2) and N_pad % cand != 0:
            cand -= 128
        if cand >= 128 and N_pad % cand == 0:
            tn = cand
    grid_n = pl.cdiv(N_pad, tn)

    # Deeper weight pipeline only when the grid is long enough to benefit.
    use_buffered = (n_buffers > 2) and (grid_n > 2)
    eff_buf = n_buffers if use_buffered else 2

    # Explicit scoped-VMEM limit sized to the actual working set (+ margin),
    # clamped to stay safe on v7x (64 MiB physical) and above v5e's 16 MiB default.
    needed = (eff_buf * (T * tn * w_itemsize + tn * 4)     # weight + bias buffers
              + 2 * B_pad * T * x_itemsize                  # resident x (double-buffered)
              + 2 * B_pad * tn * out_itemsize)              # output tiles
    vmem_limit = int(min(max(needed + (4 << 20), 16 << 20), 48 << 20))

    cost = pl.CostEstimate(
        flops=2 * B_pad * T * N_pad,
        transcendentals=0,
        bytes_accessed=(T * N_pad * w_itemsize
                        + B_pad * T * x_itemsize
                        + N_pad * 4
                        + B_pad * N_pad * out_itemsize),
    )

    w_spec_kwargs = {}
    if use_buffered:
        w_spec_kwargs["pipeline_mode"] = pl.Buffered(n_buffers)
    w_spec = pl.BlockSpec((T, tn), lambda j: (0, j), **w_spec_kwargs)

    out = pl.pallas_call(
        _text_encoder_kernel,
        out_shape=jax.ShapeDtypeStruct((B_pad, N_pad), x.dtype),
        grid_spec=pltpu.PrefetchScalarGridSpec(
            num_scalar_prefetch=0,
            grid=(grid_n,),
            in_specs=[
                # full (padded) x every step — block equals full array dims
                pl.BlockSpec((B_pad, T), lambda j: (0, 0)),
                # one lane-dense N tile of the weight slab per step
                w_spec,
                # matching bias tile (leading dim is the full size-1 dim)
                pl.BlockSpec((1, tn), lambda j: (0, j)),
            ],
            out_specs=pl.BlockSpec((B_pad, tn), lambda j: (0, j)),
        ),
        compiler_params=pltpu.CompilerParams(
            dimension_semantics=("parallel",),
            vmem_limit_bytes=vmem_limit,
        ),
        cost_estimate=cost,
    )(x_pad, w_all, b_all)

    # Per-layer views + rearrange 'b (n d) -> b n d' (free reshapes in wrapper).
    return [
        out[:B, l * size:(l + 1) * size].reshape(B, embedding_tokens, embedding_dim)
        for l in range(depth)
    ]


def reference_forward(x, weights, biases, *, embedding_tokens, embedding_dim):
    B = x.shape[0]
    outs = []
    for l in range(weights.shape[0]):
        y = x @ weights[l].T + biases[l]
        outs.append(y.reshape(B, embedding_tokens, embedding_dim))
    return outs


if __name__ == "__main__":
    # Small shapes consistent with the module
    batch = 2
    text_embedding_dim = 32
    embedding_dim = 16
    embedding_tokens = 1
    depth = 4
    size = embedding_dim * embedding_tokens

    key = jax.random.PRNGKey(0)
    kx, kw, kb = jax.random.split(key, 3)

    x = jax.random.normal(kx, (batch, text_embedding_dim), dtype=jnp.float32)
    # Deterministic synthetic parameter init (nn.Linear-like scale)
    bound = 1.0 / (text_embedding_dim ** 0.5)
    weights = jax.random.uniform(
        kw, (depth, size, text_embedding_dim), dtype=jnp.float32,
        minval=-bound, maxval=bound)
    biases = jax.random.uniform(
        kb, (depth, size), dtype=jnp.float32, minval=-bound, maxval=bound)

    refs = reference_forward(
        x, weights, biases,
        embedding_tokens=embedding_tokens, embedding_dim=embedding_dim)

    fwd = jax.jit(functools.partial(
        text_encoder_forward,
        depth=depth, embedding_tokens=embedding_tokens, embedding_dim=embedding_dim))

    # --- f32 weight stream: exact match to the PyTorch-style reference ---
    w_all_f32, b_all_f32 = prepare_text_encoder_params(weights, biases)
    outs = fwd(x, w_all_f32, b_all_f32)
    outs = [jax.block_until_ready(o) for o in outs]
    for o, r in zip(outs, refs):
        assert o.shape == (batch, embedding_tokens, embedding_dim)
        assert jnp.allclose(o, r, atol=1e-5, rtol=1e-5)

    # --- bf16 weight stream (halved HBM traffic), f32 MXU accumulation ---
    # Opt-in accuracy/bandwidth trade-off; recommended default on v5e.
    w_all_bf16, b_all_bf16 = prepare_text_encoder_params(
        weights, biases, weight_dtype=jnp.bfloat16)
    outs_bf16 = fwd(x, w_all_bf16, b_all_bf16)
    outs_bf16 = [jax.block_until_ready(o) for o in outs_bf16]
    for o, r in zip(outs_bf16, refs):
        assert o.shape == (batch, embedding_tokens, embedding_dim)
        assert jnp.allclose(o, r, atol=5e-2, rtol=5e-2)

    print("KERNEL_OK")
</pallas_src>

<mosaic_0001>
module attributes {stable_mosaic.version = 11 : i64} {
  func.func @_text_encoder_kernel(%arg0: i32, %arg1: memref<8x32xf32, #tpu.memory_space<vmem>>, %arg2: memref<32x128xf32, #tpu.memory_space<vmem>>, %arg3: memref<1x128xf32, #tpu.memory_space<vmem>>, %arg4: memref<8x128xf32, #tpu.memory_space<vmem>>) attributes {dimension_semantics = [#tpu.dimension_semantics<parallel>], iteration_bounds = array<i64: 1>, scalar_prefetch = 0 : i64, scratch_operands = 0 : i64, tpu.core_type = #tpu.core_type<tc>, window_params = [{pipeline_mode = #tpu.pipeline_mode<synchronous>, transform_indices = @transform_0, window_bounds = array<i64: 8, 32>}, {transform_indices = @transform_1, window_bounds = array<i64: 32, 128>}, {transform_indices = @transform_2, window_bounds = array<i64: 1, 128>}, {transform_indices = @transform_3, window_bounds = array<i64: 8, 128>}]} {
    %c0 = arith.constant 0 : index
    %c0_0 = arith.constant 0 : index
    %0 = vector.load %arg1[%c0, %c0_0] : memref<8x32xf32, #tpu.memory_space<vmem>>, vector<8x32xf32>
    %c0_1 = arith.constant 0 : index
    %c0_2 = arith.constant 0 : index
    %1 = vector.load %arg2[%c0_1, %c0_2] : memref<32x128xf32, #tpu.memory_space<vmem>>, vector<32x128xf32>
    %cst = arith.constant dense<0.000000e+00> : vector<8x128xf32>
    %2 = tpu.matmul %0, %1, %cst {dimension_numbers = #tpu.dot_dimension_numbers<[1], [0], [0], [1], [0, 0, 1, 1], [], []>} : vector<8x32xf32>, vector<32x128xf32>, vector<8x128xf32> -> vector<8x128xf32>
    %c0_3 = arith.constant 0 : index
    %c0_4 = arith.constant 0 : index
    %3 = vector.load %arg3[%c0_3, %c0_4] : memref<1x128xf32, #tpu.memory_space<vmem>>, vector<1x128xf32>
    %4 = vector.broadcast %3 : vector<1x128xf32> to vector<8x128xf32>
    %5 = arith.addf %2, %4 : vector<8x128xf32>
    %c0_5 = arith.constant 0 : index
    %c0_6 = arith.constant 0 : index
    %6 = vector.load %arg4[%c0_5, %c0_6] : memref<8x128xf32, #tpu.memory_space<vmem>>, vector<8x128xf32>
    tpu.vector_store %arg4[%c0_5, %c0_6], %5 {strides = array<i32>} : memref<8x128xf32, #tpu.memory_space<vmem>>, vector<8x128xf32>,
    return
  }
  func.func @transform_0(%arg0: i32) -> (i32, i32) {
    %c0_i32 = arith.constant 0 : i32
    %c0_i32_0 = arith.constant 0 : i32
    %c0_i32_1 = arith.constant 0 : i32
    return %c0_i32, %c0_i32_0 : i32, i32
  }
  func.func @transform_1(%arg0: i32) -> (i32, i32) {
    %c0_i32 = arith.constant 0 : i32
    %c0_i32_0 = arith.constant 0 : i32
    return %c0_i32, %arg0 : i32, i32
  }
  func.func @transform_2(%arg0: i32) -> (i32, i32) {
    %c0_i32 = arith.constant 0 : i32
    %c0_i32_0 = arith.constant 0 : i32
    return %c0_i32, %arg0 : i32, i32
  }
  func.func @transform_3(%arg0: i32) -> (i32, i32) {
    %c0_i32 = arith.constant 0 : i32
    %c0_i32_0 = arith.constant 0 : i32
    return %c0_i32, %arg0 : i32, i32
  }
}

</mosaic_0001>

<bundles_post_ra>
// kernel: text_encoder_forward.1
= control target key start
LH: loop header
LB: loop body
LE: loop exit
PB: predicated region body
PF: predicated region fallthrough
CT: control target
= control target key end

     0   :  { %8 = vsyncpa [#allocation3], 0  ;;  %s100_s15 = smov [#allocation2]   ;;  %s101_s17 = smov 128   ;;  %s135_s0 = inlined_call_operand.vmem [shape: f32[8,32], index: 0, kind: input, shape index: {}]   ;;  %s136_s1 = inlined_call_operand.hbm [shape: f32[32,128], index: 1, kind: input, shape index: {}]   ;;  %s137_s2 = inlined_call_operand.vmem [shape: f32[1,128], index: 2, kind: input, shape index: {}]   ;;  %s138_s3 = inlined_call_operand.vmem [shape: f32[8,128], index: 3, kind: output, shape index: {}]  }
   0x1   :  { %s15_s14 = sshll.u32 %s136_s1, 4  ;;  %s17_s16 = sshll.u32 %s100_s15, 4  ;;  %s16_s14 = int_to_ptr.hbm [resolvable:$true] %s15_s14  ;;  %s18_s16 = int_to_ptr.vmem [resolvable:$true] %s17_s16 }
   0x2   :  { %s102_s18 = smov 8  }
   0x3   :  { %23 = dma.hbm_to_vmem [thread:$0]  %s16_s14, 512, %s18_s16, [#allocation3], %s101_s17, %s101_s17, %s102_s18  }
   0x4   :  { %98 = dma.done.wait [#allocation3], 512  }
   0x5   :  { %99 = vsyncadd [#allocation3], 4294966784  ;;  %v34_v0 = vld [vmem:[#allocation2 + $0x18] sm:$0xff]  ;;  %v33_v1 = vld [vmem:[#allocation2 + $0x10] sm:$0xff]  ;;  %vm39_vm0 = vcmask 261120  }
   0x6   :  { %55 = vmatpush.msra.mxu0 %v34_v0  ;;  %v32_v2 = vld [vmem:[#allocation2 + $0x8] sm:$0xff]  ;;  %v31_v3 = vld [vmem:[#allocation2] sm:$0xff] }
   0x7   :  { %v30_v4 = vld [vmem:[%s135_s0] sm:$0xff] }
   0x8   :  { %56 = vmatpush.msra.mxu0 %v33_v1  ;;  %v73_v5 = vld [vmem:[%s137_s2] ss:$0 sm:$0xff] }
   0xa   :  { %57 = vmatpush.msra.mxu0 %v32_v2 }
   0xc   :  { %58 = vmatpush.msra.mxu0 %v31_v3 }
   0xd   :  { %69 = vmatmul.msk.f32.vlgmr.msra.gmra.mxu0 %vm39_vm0, %v30_v4 }
  0x8a   :  { %v60_v6 = vpop.f32.mrf.mxu0 }
  0x8b   :  { %v61_v7 = vadd.f32 %v73_v5, %v60_v6 }
  0x8d   :  { %63 = vst [vmem:[%s138_s3] sm:$0xff] %v61_v7 }
  0x8e   :  { %68 = vsyncpa [#allocation3], 1 }

</bundles_post_ra>
